<compile_context>
chip_gen: v7x
topology: tpu7x:2x2x1
jax: 0.10.0
libtpu: 0.0.40
codegen_flags: <defaults>
</compile_context>

<pallas_src>
import functools

import jax
import jax.numpy as jnp
from jax.experimental import pallas as pl
from jax.experimental.pallas import tpu as pltpu

EPS = 1e-3  # BatchNorm2d eps


def _round_up(x, m):
    return ((x + m - 1) // m) * m


# ------------------------------------------------------------- fused path --
def fused_bn_conv1x1_kernel(x_ref, gamma_ref, beta_ref, w_ref, o_ref, *,
                            inv_count, eps):
    """Training-mode BN + 1x1 conv on a VMEM-resident [C, P] slab."""
    x = x_ref[...]                                              # [C, P]
    mean = jnp.sum(x, axis=1, keepdims=True) * inv_count        # [C, 1]
    xc = x - mean
    var = jnp.sum(xc * xc, axis=1, keepdims=True) * inv_count   # [C, 1] (centered)
    s = gamma_ref[...] * jax.lax.rsqrt(var + eps)               # [C, 1]
    y = xc * s + beta_ref[...]                                  # normalized [C, P]
    o_ref[...] = jnp.dot(w_ref[...], y,
                         preferred_element_type=jnp.float32)    # [Cout, P]


def _bn_conv1x1_fused(x_cp, gamma, beta, w_oi):
    C, P = x_cp.shape
    Cout = w_oi.shape[0]
    return pl.pallas_call(
        functools.partial(fused_bn_conv1x1_kernel, inv_count=1.0 / P, eps=EPS),
        out_shape=jax.ShapeDtypeStruct((Cout, P), jnp.float32),
        grid=(1,),
        in_specs=[
            pl.BlockSpec((C, P), lambda i: (0, 0)),
            pl.BlockSpec((C, 1), lambda i: (0, 0)),
            pl.BlockSpec((C, 1), lambda i: (0, 0)),
            pl.BlockSpec((Cout, C), lambda i: (0, 0)),
        ],
        out_specs=pl.BlockSpec((Cout, P), lambda i: (0, 0)),
        compiler_params=pltpu.CompilerParams(
            dimension_semantics=("arbitrary",)),
        cost_estimate=pl.CostEstimate(
            flops=2 * Cout * C * P + 6 * C * P,
            transcendentals=C,
            bytes_accessed=4 * (C * P + Cout * C + 2 * C + Cout * P)),
    )(x_cp, gamma.reshape(C, 1), beta.reshape(C, 1), w_oi)


# -------------------------------------------------- large-P fallback path --
def bn_stats_kernel(x_ref, gamma_ref, beta_ref, s_ref, b_ref,
                    sum_acc, sq_acc, *, inv_count, eps):
    """Accumulate per-channel sum/sumsq over P tiles; finalize folded (s, b)."""
    i = pl.program_id(0)

    @pl.when(i == 0)
    def _init():
        sum_acc[...] = jnp.zeros_like(sum_acc)
        sq_acc[...] = jnp.zeros_like(sq_acc)

    x = x_ref[...]                                          # [C, TILE_P]
    sum_acc[...] += jnp.sum(x, axis=1, keepdims=True)       # [C, 1]
    sq_acc[...] += jnp.sum(x * x, axis=1, keepdims=True)    # [C, 1]

    @pl.when(i == pl.num_programs(0) - 1)
    def _finalize():
        mean = sum_acc[...] * inv_count
        var = jnp.maximum(sq_acc[...] * inv_count - mean * mean, 0.0)
        s = gamma_ref[...] * jax.lax.rsqrt(var + eps)       # [C, 1]
        s_ref[...] = s
        b_ref[...] = beta_ref[...] - mean * s               # [C, 1]


def conv1x1_kernel(w_ref, bias_ref, x_ref, o_ref):
    """o = (W*s) @ x + (W @ b): lane-dense [Cout, TILE_P] MXU matmul."""
    o_ref[...] = (
        jnp.dot(w_ref[...], x_ref[...], preferred_element_type=jnp.float32)
        + bias_ref[...]
    )


def _bn_conv1x1_two_pass(x_cp, gamma, beta, w_oi, *, max_tile_p=4096):
    """Two pipelined pallas_calls; used only when x can't stay VMEM-resident."""
    C, P = x_cp.shape
    Cout = w_oi.shape[0]

    tile_p = min(max_tile_p, _round_up(P, 128))   # lane-dense, scales with P
    Pp = _round_up(P, tile_p)
    n_tiles = Pp // tile_p
    x_pad = jnp.pad(x_cp, ((0, 0), (0, Pp - P))) if Pp != P else x_cp

    # pass 1: per-channel batch stats -> folded (scale, shift)
    s_c1, b_c1 = pl.pallas_call(
        functools.partial(bn_stats_kernel, inv_count=1.0 / P, eps=EPS),
        out_shape=(jax.ShapeDtypeStruct((C, 1), jnp.float32),
                   jax.ShapeDtypeStruct((C, 1), jnp.float32)),
        grid=(n_tiles,),
        in_specs=[
            pl.BlockSpec((C, tile_p), lambda i: (0, i)),
            pl.BlockSpec((C, 1), lambda i: (0, 0)),
            pl.BlockSpec((C, 1), lambda i: (0, 0)),
        ],
        out_specs=[
            pl.BlockSpec((C, 1), lambda i: (0, 0)),
            pl.BlockSpec((C, 1), lambda i: (0, 0)),
        ],
        scratch_shapes=[pltpu.VMEM((C, 1), jnp.float32),
                        pltpu.VMEM((C, 1), jnp.float32)],
        compiler_params=pltpu.CompilerParams(
            dimension_semantics=("arbitrary",)),
    )(x_pad, gamma.reshape(C, 1), beta.reshape(C, 1))

    # fold BN into conv weight/bias (tiny O(C*Cout) ops)
    w_s = w_oi * jnp.reshape(s_c1, (1, C))        # [Cout, C]
    bias = jnp.dot(w_oi, b_c1)                    # [Cout, 1]

    # pass 2: P-tiled, pipelined MXU matmul + bias broadcast ("parallel" axis
    # -> megacore-shardable on v7x)
    out_cp = pl.pallas_call(
        conv1x1_kernel,
        out_shape=jax.ShapeDtypeStruct((Cout, Pp), jnp.float32),
        grid=(n_tiles,),
        in_specs=[
            pl.BlockSpec((Cout, C), lambda i: (0, 0)),
            pl.BlockSpec((Cout, 1), lambda i: (0, 0)),
            pl.BlockSpec((C, tile_p), lambda i: (0, i)),
        ],
        out_specs=pl.BlockSpec((Cout, tile_p), lambda i: (0, i)),
        compiler_params=pltpu.CompilerParams(
            dimension_semantics=("parallel",)),
    )(w_s, bias, x_pad)

    return out_cp[:, :P]


# ------------------------------------------------------------------ driver --
def bn_conv1x1(x_nchw, gamma, beta, w_oi, *, vmem_budget_bytes=20 << 20,
               force_two_pass=False):
    """x_nchw: [N, C, H, W]; gamma/beta: [C]; w_oi: [Cout, C] (1x1 kernel)."""
    N, C, H, W = x_nchw.shape
    Cout = w_oi.shape[0]
    P = N * H * W

    if N == 1:
        x_cp = x_nchw.reshape(C, P)       # free channel-major view (no transpose)
    else:
        # TODO(synk): for N>1 this transpose is an extra HBM pass over the
        # activations; a batched grid over N would avoid it.
        x_cp = jnp.transpose(x_nchw, (1, 0, 2, 3)).reshape(C, P)

    # rough f32 VMEM footprint of the fully resident fused path
    # (x + normalized copy + output, double-buffered blocks, weights).
    fused_bytes = 4 * (3 * C * P + 2 * Cout * P + Cout * C + 4 * C)
    if force_two_pass or fused_bytes > vmem_budget_bytes:
        out_cp = _bn_conv1x1_two_pass(x_cp, gamma, beta, w_oi)
    else:
        out_cp = _bn_conv1x1_fused(x_cp, gamma, beta, w_oi)

    if N == 1:
        return out_cp.reshape(1, Cout, H, W)          # free view back to NCHW
    return jnp.transpose(out_cp.reshape(Cout, N, H, W), (1, 0, 2, 3))


def _reference(x_nchw, gamma, beta, w_oi):
    # Pure-JAX reference (training-mode BN + 1x1 conv, bias=False).
    mean = jnp.mean(x_nchw, axis=(0, 2, 3), keepdims=True)
    var = jnp.mean((x_nchw - mean) ** 2, axis=(0, 2, 3), keepdims=True)
    y = (x_nchw - mean) * jax.lax.rsqrt(var + EPS)
    y = y * gamma[None, :, None, None] + beta[None, :, None, None]
    return jnp.einsum("nchw,oc->nohw", y, w_oi)


if __name__ == "__main__":
    N, C, H, W, Cout = 1, 48, 14, 14, 144

    key = jax.random.PRNGKey(0)
    kx, kg, kb, kw = jax.random.split(key, 4)

    x = jax.random.normal(kx, (N, C, H, W), dtype=jnp.float32)
    # Deterministic synthetic parameters (no checkpoint load).
    gamma = 1.0 + 0.1 * jax.random.normal(kg, (C,), dtype=jnp.float32)
    beta = 0.1 * jax.random.normal(kb, (C,), dtype=jnp.float32)
    w_oi = jax.random.normal(kw, (Cout, C), dtype=jnp.float32) / jnp.sqrt(C)

    ref = _reference(x, gamma, beta, w_oi)

    # primary (fused, single pallas_call) path
    out = jax.block_until_ready(bn_conv1x1(x, gamma, beta, w_oi))
    assert out.shape == (N, Cout, H, W), out.shape
    err = float(jnp.max(jnp.abs(out - ref)))
    assert jnp.allclose(out, ref, atol=1e-3, rtol=1e-3), err

    # also exercise the large-P two-pass fallback at the same small shape
    out_tp = jax.block_until_ready(
        bn_conv1x1(x, gamma, beta, w_oi, force_two_pass=True))
    err_tp = float(jnp.max(jnp.abs(out_tp - ref)))
    assert jnp.allclose(out_tp, ref, atol=1e-3, rtol=1e-3), err_tp

    print("KERNEL_OK")
</pallas_src>

<mosaic_0001>
module attributes {stable_mosaic.version = 11 : i64} {
  func.func @fused_bn_conv1x1_kernel(%arg0: i32, %arg1: memref<48x196xf32, #tpu.memory_space<vmem>>, %arg2: memref<48x1xf32, #tpu.memory_space<vmem>>, %arg3: memref<48x1xf32, #tpu.memory_space<vmem>>, %arg4: memref<144x48xf32, #tpu.memory_space<vmem>>, %arg5: memref<144x196xf32, #tpu.memory_space<vmem>>) attributes {dimension_semantics = [#tpu.dimension_semantics<arbitrary>], iteration_bounds = array<i64: 1>, scalar_prefetch = 0 : i64, scratch_operands = 0 : i64, tpu.core_type = #tpu.core_type<tc>, window_params = [{pipeline_mode = #tpu.pipeline_mode<synchronous>, transform_indices = @transform_0, window_bounds = array<i64: 48, 196>}, {pipeline_mode = #tpu.pipeline_mode<synchronous>, transform_indices = @transform_1, window_bounds = array<i64: 48, 1>}, {pipeline_mode = #tpu.pipeline_mode<synchronous>, transform_indices = @transform_2, window_bounds = array<i64: 48, 1>}, {pipeline_mode = #tpu.pipeline_mode<synchronous>, transform_indices = @transform_3, window_bounds = array<i64: 144, 48>}, {pipeline_mode = #tpu.pipeline_mode<synchronous>, transform_indices = @transform_4, window_bounds = array<i64: 144, 196>}]} {
    %c0 = arith.constant 0 : index
    %c0_0 = arith.constant 0 : index
    %0 = vector.load %arg1[%c0, %c0_0] : memref<48x196xf32, #tpu.memory_space<vmem>>, vector<48x196xf32>
    %cst = arith.constant dense<0.000000e+00> : vector<48xf32>
    %1 = vector.multi_reduction <add>, %0, %cst [1] : vector<48x196xf32> to vector<48xf32>
    %2 = vector.shape_cast %1 : vector<48xf32> to vector<48x1xf32>
    %cst_1 = arith.constant 0.00510204071 : f32
    %3 = vector.broadcast %cst_1 : f32 to vector<48x1xf32>
    %4 = arith.mulf %2, %3 : vector<48x1xf32>
    %5 = vector.broadcast %4 : vector<48x1xf32> to vector<48x196xf32>
    %6 = arith.subf %0, %5 : vector<48x196xf32>
    %7 = arith.mulf %6, %6 : vector<48x196xf32>
    %cst_2 = arith.constant dense<0.000000e+00> : vector<48xf32>
    %8 = vector.multi_reduction <add>, %7, %cst_2 [1] : vector<48x196xf32> to vector<48xf32>
    %9 = vector.shape_cast %8 : vector<48xf32> to vector<48x1xf32>
    %cst_3 = arith.constant 0.00510204071 : f32
    %10 = vector.broadcast %cst_3 : f32 to vector<48x1xf32>
    %11 = arith.mulf %9, %10 : vector<48x1xf32>
    %c0_4 = arith.constant 0 : index
    %c0_5 = arith.constant 0 : index
    %12 = vector.load %arg2[%c0_4, %c0_5] : memref<48x1xf32, #tpu.memory_space<vmem>>, vector<48x1xf32>
    %cst_6 = arith.constant 1.000000e-03 : f32
    %13 = vector.broadcast %cst_6 : f32 to vector<48x1xf32>
    %14 = arith.addf %11, %13 : vector<48x1xf32>
    %15 = math.rsqrt %14 : vector<48x1xf32>
    %16 = arith.mulf %12, %15 : vector<48x1xf32>
    %17 = vector.broadcast %16 : vector<48x1xf32> to vector<48x196xf32>
    %18 = arith.mulf %6, %17 : vector<48x196xf32>
    %c0_7 = arith.constant 0 : index
    %c0_8 = arith.constant 0 : index
    %19 = vector.load %arg3[%c0_7, %c0_8] : memref<48x1xf32, #tpu.memory_space<vmem>>, vector<48x1xf32>
    %20 = vector.broadcast %19 : vector<48x1xf32> to vector<48x196xf32>
    %21 = arith.addf %18, %20 : vector<48x196xf32>
    %c0_9 = arith.constant 0 : index
    %c0_10 = arith.constant 0 : index
    %22 = vector.load %arg4[%c0_9, %c0_10] : memref<144x48xf32, #tpu.memory_space<vmem>>, vector<144x48xf32>
    %cst_11 = arith.constant dense<0.000000e+00> : vector<144x196xf32>
    %23 = tpu.matmul %22, %21, %cst_11 {dimension_numbers = #tpu.dot_dimension_numbers<[1], [0], [0], [1], [0, 0, 1, 1], [], []>} : vector<144x48xf32>, vector<48x196xf32>, vector<144x196xf32> -> vector<144x196xf32>
    %c0_12 = arith.constant 0 : index
    %c0_13 = arith.constant 0 : index
    %24 = vector.load %arg5[%c0_12, %c0_13] : memref<144x196xf32, #tpu.memory_space<vmem>>, vector<144x196xf32>
    tpu.vector_store %arg5[%c0_12, %c0_13], %23 {strides = array<i32>} : memref<144x196xf32, #tpu.memory_space<vmem>>, vector<144x196xf32>,
    return
  }
  func.func @transform_0(%arg0: i32) -> (i32, i32) {
    %c0_i32 = arith.constant 0 : i32
    %c0_i32_0 = arith.constant 0 : i32
    %c0_i32_1 = arith.constant 0 : i32
    return %c0_i32, %c0_i32_0 : i32, i32
  }
  func.func @transform_1(%arg0: i32) -> (i32, i32) {
    %c0_i32 = arith.constant 0 : i32
    %c0_i32_0 = arith.constant 0 : i32
    %c0_i32_1 = arith.constant 0 : i32
    return %c0_i32, %c0_i32_0 : i32, i32
  }
  func.func @transform_2(%arg0: i32) -> (i32, i32) {
    %c0_i32 = arith.constant 0 : i32
    %c0_i32_0 = arith.constant 0 : i32
    %c0_i32_1 = arith.constant 0 : i32
    return %c0_i32, %c0_i32_0 : i32, i32
  }
  func.func @transform_3(%arg0: i32) -> (i32, i32) {
    %c0_i32 = arith.constant 0 : i32
    %c0_i32_0 = arith.constant 0 : i32
    %c0_i32_1 = arith.constant 0 : i32
    return %c0_i32, %c0_i32_0 : i32, i32
  }
  func.func @transform_4(%arg0: i32) -> (i32, i32) {
    %c0_i32 = arith.constant 0 : i32
    %c0_i32_0 = arith.constant 0 : i32
    %c0_i32_1 = arith.constant 0 : i32
    return %c0_i32, %c0_i32_0 : i32, i32
  }
}

</mosaic_0001>

<bundles_post_ra>
// kernel: tpu_custom_call.1
= control target key start
LH: loop header
LB: loop body
LE: loop exit
PB: predicated region body
PF: predicated region fallthrough
CT: control target
= control target key end

     0   :  { %vm30_vm0 = vcmask 556032   ;;  %s900_s0 = inlined_call_operand.vmem [shape: f32[48,196], index: 0, kind: input, shape index: {}]   ;;  %s901_s1 = inlined_call_operand.vmem [shape: f32[48,1], index: 1, kind: input, shape index: {}]   ;;  %s902_s2 = inlined_call_operand.vmem [shape: f32[48,1], index: 2, kind: input, shape index: {}]   ;;  %s903_s3 = inlined_call_operand.vmem [shape: f32[144,48], index: 3, kind: input, shape index: {}]   ;;  %s904_s4 = inlined_call_operand.hbm [shape: f32[144,196], index: 4, kind: output, shape index: {}]  }
   0x1   :  { %v18_v0 = vld [vmem:[%s900_s0] sm:$0xff]  ;;  %v19_v1 = vld [vmem:[%s900_s0 + $0x8] sm:$0xff]  ;;  %v20_v5 = vld [vmem:[%s900_s0 + $0x10] sm:$0xff] }
   0x2   :  { %v22_v2 = vld [vmem:[%s900_s0 + $0x20] sm:$0xff]  ;;  %v31_v3 = vsel %vm30_vm0, %v19_v1, 0.0  ;;  %v23_v4 = vld [vmem:[%s900_s0 + $0x28] sm:$0xff]  ;;  %v21_v6 = vld [vmem:[%s900_s0 + $0x18] sm:$0xff] }
   0x3   :  { %v32_v7 = vadd.f32 %v31_v3, %v18_v0  ;;  %v39_v8 = vsel %vm30_vm0, %v23_v4, 0.0  ;;  %v35_v9 = vsel %vm30_vm0, %v21_v6, 0.0  ;;  %v24_v10 = vld [vmem:[%s900_s0 + $0x30] sm:$0xff]  ;;  %v25_v11 = vld [vmem:[%s900_s0 + $0x38] sm:$0xff]  ;;  %v27_v15 = vld [vmem:[%s900_s0 + $0x48] sm:$0xff] }
   0x4   :  { %v40_v12 = vadd.f32 %v39_v8, %v22_v2  ;;  %v43_v13 = vsel %vm30_vm0, %v25_v11, 0.0  ;;  %v29_v14 = vld [vmem:[%s900_s0 + $0x58] sm:$0xff]  ;;  %v36_v16 = vadd.f32 %v35_v9, %v20_v5 }
   0x5   :  { %33 = vadd.xlane.f32.xlu0 %v32_v7 }
   0x6   :  { %9 = vsyncpa [#allocation3], 0  ;;  %41 = vadd.xlane.f32.xlu1 %v40_v12  ;;  %v44_v17 = vadd.f32 %v43_v13, %v24_v10  ;;  %v26_v18 = vld [vmem:[%s900_s0 + $0x40] sm:$0xff]  ;;  %v47_v19 = vsel %vm30_vm0, %v27_v15, 0.0  ;;  %v28_v20 = vld [vmem:[%s900_s0 + $0x50] sm:$0xff]  ;;  %v51_v21 = vsel %vm30_vm0, %v29_v14, 0.0 }
   0x7   :  { %v48_v22 = vadd.f32 %v47_v19, %v26_v18  ;;  %v52_v23 = vadd.f32 %v51_v21, %v28_v20  ;;  %v606_v24 = vmov 0   ;;  %v181_v9 = vld [vmem:[%s902_s2] sm:$0xff]  ;;  %v184_v12 = vld [vmem:[%s902_s2 + $0x18] sm:$0xff]  ;;  %vm247_vm1 = vcmask 392192  }
   0x8   :  { %569 = vset.pattern.permute.xlu1 %v606_v24  ;;  %568 = vset.pattern.permute.xlu0 %v606_v24 }
   0x9   :  { %37 = vadd.xlane.f32.xlu0 %v36_v16 }
   0xa   :  { %45 = vadd.xlane.f32.xlu1 %v44_v17 }
   0xd   :  { %49 = vadd.xlane.f32.xlu0 %v48_v22 }
   0xe   :  { %53 = vadd.xlane.f32.xlu1 %v52_v23 }
  0x92   :  { %v34_v25 = vpop.xlane.xlu0 %33 }
  0x93   :  { %v55_v26 = vmul.f32 0.0051020407, %v34_v25  ;;  %v42_v27 = vpop.xlane.xlu1 %41 }
  0x94   :  { %v57_v28 = vmul.f32 0.0051020407, %v42_v27 }
  0x95   :  { %v678_v29 = vsub.f32 %v18_v0, %v55_v26  ;;  %v680_v30 = vsub.f32 %v19_v1, %v55_v26 }
  0x96   :  { %v682_v31 = vsub.f32 %v22_v2, %v57_v28  ;;  %v684_v32 = vsub.f32 %v23_v4, %v57_v28  ;;  %v38_v33 = vpop.xlane.xlu0 %37 }
  0x97   :  { %v56_v34 = vmul.f32 0.0051020407, %v38_v33  ;;  %v46_v35 = vpop.xlane.xlu1 %45  ;;  %v73_v36 = vmul.f32 %v678_v29, %v678_v29  ;;  %v74_v37 = vmul.f32 %v680_v30, %v680_v30 }
  0x98   :  { %v58_v38 = vmul.f32 0.0051020407, %v46_v35  ;;  %v77_v39 = vmul.f32 %v682_v31, %v682_v31  ;;  %v78_v40 = vmul.f32 %v684_v32, %v684_v32 }
  0x99   :  { %v694_v41 = vsub.f32 %v20_v5, %v56_v34  ;;  %v696_v42 = vsub.f32 %v21_v6, %v56_v34  ;;  %v85_v43 = vsel %vm30_vm0, %v74_v37, 0.0  ;;  %v115_v34 = vld [vmem:[%s901_s1] sm:$0xff] }
  0x9a   :  { %v699_v44 = vsub.f32 %v24_v10, %v58_v38  ;;  %v701_v45 = vsub.f32 %v25_v11, %v58_v38  ;;  %v86_v46 = vadd.f32 %v85_v43, %v73_v36  ;;  %v50_v47 = vpop.xlane.xlu0 %49  ;;  %v93_v48 = vsel %vm30_vm0, %v78_v40, 0.0  ;;  %v182_v10 = vld [vmem:[%s902_s2 + $0x8] sm:$0xff]  ;;  %v183_v11 = vld [vmem:[%s902_s2 + $0x10] sm:$0xff] }
  0x9b   :  { %v54_v49 = vpop.xlane.xlu1 %53  ;;  %v75_v50 = vmul.f32 %v694_v41, %v694_v41  ;;  %v76_v51 = vmul.f32 %v696_v42, %v696_v42  ;;  %v59_v52 = vmul.f32 0.0051020407, %v50_v47  ;;  %v94_v54 = vadd.f32 %v93_v48, %v77_v39  ;;  %v116_v38 = vld [vmem:[%s901_s1 + $0x8] sm:$0xff]  ;;  %v117_v40 = vld [vmem:[%s901_s1 + $0x10] sm:$0xff] }
  0x9c   :  { %87 = vadd.xlane.f32.xlu0 %v86_v46  ;;  %v60_v53 = vmul.f32 0.0051020407, %v54_v49  ;;  %v79_v55 = vmul.f32 %v699_v44, %v699_v44  ;;  %v80_v56 = vmul.f32 %v701_v45, %v701_v45  ;;  %v118_v49 = vld [vmem:[%s901_s1 + $0x18] sm:$0xff] }
  0x9d   :  { %v89_v57 = vsel %vm30_vm0, %v76_v51, 0.0  ;;  %v713_v58 = vsub.f32 %v26_v18, %v59_v52  ;;  %v715_v59 = vsub.f32 %v27_v15, %v59_v52 }
  0x9e   :  { %v717_v60 = vsub.f32 %v28_v20, %v60_v53  ;;  %v719_v61 = vsub.f32 %v29_v14, %v60_v53  ;;  %v90_v62 = vadd.f32 %v89_v57, %v75_v50  ;;  %v97_v63 = vsel %vm30_vm0, %v80_v56, 0.0  ;;  %v120_v50 = vld [vmem:[%s901_s1 + $0x28] sm:$0xff] }
  0x9f   :  { %v81_v0 = vmul.f32 %v713_v58, %v713_v58  ;;  %v82_v1 = vmul.f32 %v715_v59, %v715_v59  ;;  %v98_v2 = vadd.f32 %v97_v63, %v79_v55  ;;  %v186_v57 = vld [vmem:[%s902_s2 + $0x28] sm:$0xff]  ;;  %v607_v63 = vmov 0.0  }
  0xa0   :  { %91 = vadd.xlane.f32.xlu1 %v90_v62  ;;  %95 = vadd.xlane.f32.xlu0 %v94_v54  ;;  %v83_v3 = vmul.f32 %v717_v60, %v717_v60  ;;  %v84_v4 = vmul.f32 %v719_v61, %v719_v61  ;;  %v119_v54 = vld [vmem:[%s901_s1 + $0x20] sm:$0xff] }
  0xa1   :  { %v101_v5 = vsel %vm30_vm0, %v82_v1, 0.0  ;;  %v185_v62 = vld [vmem:[%s902_s2 + $0x20] sm:$0xff]  ;;  %366 = vmatprep.mubr.f32.mxu0 %v607_v63  ;;  %420 = vmatprep.mubr.f32.mxu1 %v607_v63 }
  0xa2   :  { %v105_v6 = vsel %vm30_vm0, %v84_v4, 0.0  ;;  %v102_v7 = vadd.f32 %v101_v5, %v81_v0 }
  0xa3   :  { %v106_v8 = vadd.f32 %v105_v6, %v83_v3 }
  0xa4   :  { %99 = vadd.xlane.f32.xlu1 %v98_v2  ;;  %103 = vadd.xlane.f32.xlu0 %v102_v7 }
  0xa8   :  { %107 = vadd.xlane.f32.xlu1 %v106_v8 }
  0xb9   :  { %189 = vperm.xlu1 %569, %v181_v9  }
  0xbd   :  { %194 = vperm.xlu1 %569, %v182_v10  }
  0xc1   :  { %199 = vperm.xlu1 %569, %v183_v11  }
  0xc5   :  { %204 = vperm.xlu1 %569, %v184_v12  }
 0x129   :  { %v88_v13 = vpop.xlane.xlu0 %87 }
 0x12a   :  { %v109_v14 = vmul.f32 0.0051020407, %v88_v13 }
 0x12c   :  { %v121_v15 = vadd.f32 0.001, %v109_v14 }
 0x12d   :  { %v92_v16 = vpop.xlane.xlu1 %91  ;;  %v96_v17 = vpop.xlane.xlu0 %95 }
 0x12e   :  { %570 = vrsqrt.f32 %v121_v15  ;;  %v110_v18 = vmul.f32 0.0051020407, %v92_v16  ;;  %v111_v19 = vmul.f32 0.0051020407, %v96_v17 }
 0x130   :  { %v122_v20 = vadd.f32 0.001, %v110_v18  ;;  %v123_v21 = vadd.f32 0.001, %v111_v19 }
 0x131   :  { %v100_v22 = vpop.xlane.xlu1 %99  ;;  %v104_v23 = vpop.xlane.xlu0 %103 }
 0x132   :  { %572 = vrsqrt.f32 %v122_v20  ;;  %v112_v24 = vmul.f32 0.0051020407, %v100_v22  ;;  %v113_v25 = vmul.f32 0.0051020407, %v104_v23 }
 0x133   :  { %574 = vrsqrt.f32 %v123_v21 }
 0x134   :  { %v124_v26 = vadd.f32 0.001, %v112_v24  ;;  %v125_v28 = vadd.f32 0.001, %v113_v25 }
 0x135   :  { %v108_v27 = vpop.xlane.xlu1 %107 }
 0x136   :  { %576 = vrsqrt.f32 %v124_v26  ;;  %v114_v33 = vmul.f32 0.0051020407, %v108_v27 }
 0x137   :  { %578 = vrsqrt.f32 %v125_v28 }
 0x138   :  { %v571_v35 = vpop.eup %570  ;;  %v126_v36 = vadd.f32 0.001, %v114_v33 }
 0x139   :  { %v133_v37 = vmul.f32 %v571_v35, %v115_v34  ;;  %v190_v0 = vpop.permute.xlu1 %189 }
 0x13a   :  { %580 = vrsqrt.f32 %v126_v36 }
 0x13b   :  { %141 = vperm.xlu0 %568, %v133_v37  }
 0x13c   :  { %v573_v39 = vpop.eup %572 }
 0x13d   :  { %v575_v43 = vpop.eup %574  ;;  %v134_v46 = vmul.f32 %v573_v39, %v116_v38  ;;  %v195_v1 = vpop.permute.xlu1 %194  ;;  %v231_v38 = vld [vmem:[%s903_s3 + $0x10] sm:$0xff]  ;;  %v240_v39 = vld [vmem:[%s903_s3 + $0x58] sm:$0xff] }
 0x13e   :  { %v135_v47 = vmul.f32 %v575_v43, %v117_v40  ;;  %v232_v40 = vld [vmem:[%s903_s3 + $0x18] sm:$0xff]  ;;  %v241_v43 = vld [vmem:[%s903_s3 + $0x60] sm:$0xff] }
 0x13f   :  { %146 = vperm.xlu1 %569, %v134_v46   ;;  %v233_v46 = vld [vmem:[%s903_s3 + $0x20] sm:$0xff] }
 0x140   :  { %v577_v48 = vpop.eup %576 }
 0x141   :  { %v579_v51 = vpop.eup %578  ;;  %v136_v52 = vmul.f32 %v577_v48, %v118_v49  ;;  %v200_v2 = vpop.permute.xlu1 %199  ;;  %v234_v48 = vld [vmem:[%s903_s3 + $0x28] sm:$0xff]  ;;  %v243_v49 = vld [vmem:[%s903_s3 + $0x70] sm:$0xff] }
 0x142   :  { %v137_v56 = vmul.f32 %v579_v51, %v119_v54  ;;  %v244_v51 = vld [vmem:[%s903_s3 + $0x78] sm:$0xff]  ;;  %v237_v54 = vld [vmem:[%s903_s3 + $0x40] sm:$0xff] }
 0x143   :  { %151 = vperm.xlu1 %569, %v135_v47   ;;  %v242_v47 = vld [vmem:[%s903_s3 + $0x68] sm:$0xff] }
 0x144   :  { %v581_v53 = vpop.eup %580 }
 0x145   :  { %v138_v55 = vmul.f32 %v581_v53, %v120_v50  ;;  %v205_v3 = vpop.permute.xlu1 %204  ;;  %v235_v50 = vld [vmem:[%s903_s3 + $0x30] sm:$0xff]  ;;  %v245_v53 = vld [vmem:[%s903_s3 + $0x80] sm:$0xff] }
 0x147   :  { %166 = vperm.xlu0 %568, %v138_v55   ;;  %156 = vperm.xlu1 %569, %v136_v52   ;;  %v236_v52 = vld [vmem:[%s903_s3 + $0x38] sm:$0xff]  ;;  %v246_v55 = vld [vmem:[%s903_s3 + $0x88] sm:$0xff] }
 0x14b   :  { %214 = vperm.xlu0 %568, %v186_v57   ;;  %161 = vperm.xlu1 %569, %v137_v56  }
 0x14f   :  { %209 = vperm.xlu1 %569, %v185_v62  }
 0x1ba   :  { %v142_v4 = vpop.permute.xlu0 %141 }
 0x1bb   :  { %v169_v5 = vmul.f32 %v142_v4, %v678_v29  ;;  %v170_v6 = vmul.f32 %v142_v4, %v680_v30 }
 0x1bd   :  { %v218_v10 = vadd.f32 %v190_v0, %v170_v6  ;;  %v217_v12 = vadd.f32 %v190_v0, %v169_v5 }
 0x1be   :  { %v147_v7 = vpop.permute.xlu1 %146 }
 0x1bf   :  { %v171_v8 = vmul.f32 %v147_v7, %v694_v41  ;;  %v172_v9 = vmul.f32 %v147_v7, %v696_v42 }
 0x1c1   :  { %v220_v11 = vadd.f32 %v195_v1, %v172_v9  ;;  %v219_v13 = vadd.f32 %v195_v1, %v171_v8 }
 0x1c2   :  { %v152_v14 = vpop.permute.xlu1 %151 }
 0x1c3   :  { %v545_v15 = vpack.c.bf16 %v220_v11, %v218_v10  ;;  %v547_v16 = vpack.c.bf16 %v219_v13, %v217_v12  ;;  %v173_v17 = vmul.f32 %v152_v14, %v682_v31  ;;  %v174_v29 = vmul.f32 %v152_v14, %v684_v32 }
 0x1c5   :  { %546 = vmatprep.subr.bf16.mxu0 %v545_v15  ;;  %557 = vmatprep.subr.bf16.mxu1 %v545_v15  ;;  %v221_v21 = vadd.f32 %v200_v2, %v173_v17  ;;  %v222_v22 = vadd.f32 %v200_v2, %v174_v29 }
 0x1c6   :  { %v157_v18 = vpop.permute.xlu1 %156  ;;  %548 = vmatpush1.bf16.msra.mxu0 %v547_v16  ;;  %560 = vmatpush1.bf16.msra.mxu1 %v547_v16  ;;  %v167_v30 = vpop.permute.xlu0 %166 }
 0x1c7   :  { %v175_v41 = vmul.f32 %v157_v18, %v699_v44  ;;  %v176_v42 = vmul.f32 %v157_v18, %v701_v45  ;;  %v179_v25 = vmul.f32 %v167_v30, %v717_v60  ;;  %v180_v32 = vmul.f32 %v167_v30, %v719_v61  ;;  %v230_v60 = vld [vmem:[%s903_s3 + $0x8] sm:$0xff]  ;;  %v239_v61 = vld [vmem:[%s903_s3 + $0x50] sm:$0xff] }
 0x1c9   :  { %v223_v19 = vadd.f32 %v205_v3, %v175_v41  ;;  %v224_v20 = vadd.f32 %v205_v3, %v176_v42 }
 0x1ca   :  { %v162_v23 = vpop.permute.xlu1 %161  ;;  %v215_v24 = vpop.permute.xlu0 %214 }
 0x1cb   :  { %v549_v26 = vpack.c.bf16 %v224_v20, %v222_v22  ;;  %v551_v31 = vpack.c.bf16 %v223_v19, %v221_v21  ;;  %v177_v27 = vmul.f32 %v162_v23, %v713_v58  ;;  %v178_v28 = vmul.f32 %v162_v23, %v715_v59  ;;  %v229_v58 = vld [vmem:[%s903_s3] sm:$0xff]  ;;  %v238_v59 = vld [vmem:[%s903_s3 + $0x48] sm:$0xff]  ;;  %s608_s3 = smov [#allocation2]  }
 0x1cc   :  { %v227_v33 = vadd.f32 %v215_v24, %v179_v25  ;;  %v228_v45 = vadd.f32 %v215_v24, %v180_v32  ;;  %s516_s14 = sshll.u32 %s608_s3, 4  ;;  %s517_s14 = int_to_ptr.vmem [resolvable:$true] %s516_s14 }
 0x1cd   :  { %550 = vmatprep.subr.bf16.mxu0 %v549_v26  ;;  %558 = vmatprep.subr.bf16.mxu1 %v549_v26  ;;  %s582_s15 = scalar_lea.vmem %s517_s14, 4608  ;;  %p587_p1 = scmp.lt.s32.totalorder %s517_s14, %s517_s14 }
 0x1ce   :  { %v210_v44 = vpop.permute.xlu1 %209  ;;  %552 = vmatpush1.bf16.msra.mxu0 %v551_v31  ;;  %561 = vmatpush1.bf16.msra.mxu1 %v551_v31  ;;  %p583_p0 = scmp.ne.s32.totalorder %s517_s14, %s582_s15  ;;  %p588_p2 = scmp.lt.s32.totalorder %s582_s15, %s582_s15 }
 0x1cf   :  { %v225_v34 = vadd.f32 %v210_v44, %v177_v27  ;;  %v226_v35 = vadd.f32 %v210_v44, %v178_v28 }
 0x1d0   :  { %p589_p3 = por %p588_p2, %p587_p1 }
 0x1d1   :  { %v553_v36 = vpack.c.bf16 %v228_v45, %v226_v35  ;;  %v555_v37 = vpack.c.bf16 %v227_v33, %v225_v34 }
 0x1d2   :  { %p590_p4 = pnand %p589_p3, %p583_p0 }
 0x1d3   :  { %554 = vmatprep.subr.bf16.mxu0 %v553_v36  ;;  %559 = vmatprep.subr.bf16.mxu1 %v553_v36 }
 0x1d4   :  { %556 = vmatpush1.bf16.msra.mxu0 %v555_v37  ;;  %562 = vmatpush1.bf16.msra.mxu1 %v555_v37 }
 0x1d7   :  { %527 = vmatmul.mubr.msk.f32.vlgmr.msra.gmra.mrb[0].mxu0 %vm247_vm1, %v229_v58  ;;  %536 = vmatmul.mubr.msk.f32.vlgmr.msra.gmra.mrb[0].mxu1 %vm247_vm1, %v238_v59 }
 0x1d8   :  { %372 = vmatprep.mubr.f32.mxu0 %v607_v63  ;;  %426 = vmatprep.mubr.f32.mxu1 %v607_v63 }
 0x1db   :  { %528 = vmatmul.mubr.msk.f32.gmra.mrb[2].mxu0 %vm247_vm1, %v230_v60  ;;  %537 = vmatmul.mubr.msk.f32.gmra.mrb[2].mxu1 %vm247_vm1, %v239_v61 }
 0x1dc   :  { %378 = vmatprep.mubr.f32.mxu0 %v607_v63  ;;  %432 = vmatprep.mubr.f32.mxu1 %v607_v63 }
 0x1df   :  { %529 = vmatmul.mubr.msk.f32.gmra.mrb[4].mxu0 %vm247_vm1, %v231_v38  ;;  %538 = vmatmul.mubr.msk.f32.gmra.mrb[4].mxu1 %vm247_vm1, %v240_v39 }
 0x1e0   :  { %384 = vmatprep.mubr.f32.mxu0 %v607_v63  ;;  %438 = vmatprep.mubr.f32.mxu1 %v607_v63 }
 0x1e3   :  { %530 = vmatmul.mubr.msk.f32.gmra.mrb[6].mxu0 %vm247_vm1, %v232_v40  ;;  %539 = vmatmul.mubr.msk.f32.gmra.mrb[6].mxu1 %vm247_vm1, %v241_v43 }
 0x1e4   :  { %390 = vmatprep.mubr.f32.mxu0 %v607_v63  ;;  %444 = vmatprep.mubr.f32.mxu1 %v607_v63 }
 0x1e7   :  { %531 = vmatmul.mubr.msk.f32.gmra.mrb[8].mxu0 %vm247_vm1, %v233_v46  ;;  %540 = vmatmul.mubr.msk.f32.gmra.mrb[8].mxu1 %vm247_vm1, %v242_v47 }
 0x1e8   :  { %396 = vmatprep.mubr.f32.mxu0 %v607_v63  ;;  %450 = vmatprep.mubr.f32.mxu1 %v607_v63 }
 0x1eb   :  { %532 = vmatmul.mubr.msk.f32.gmra.mrb[10].mxu0 %vm247_vm1, %v234_v48  ;;  %541 = vmatmul.mubr.msk.f32.gmra.mrb[10].mxu1 %vm247_vm1, %v243_v49 }
 0x1ec   :  { %402 = vmatprep.mubr.f32.mxu0 %v607_v63  ;;  %456 = vmatprep.mubr.f32.mxu1 %v607_v63 }
 0x1ef   :  { %533 = vmatmul.mubr.msk.f32.gmra.mrb[12].mxu0 %vm247_vm1, %v235_v50  ;;  %542 = vmatmul.mubr.msk.f32.gmra.mrb[12].mxu1 %vm247_vm1, %v244_v51 }
 0x1f0   :  { %408 = vmatprep.mubr.f32.mxu0 %v607_v63  ;;  %462 = vmatprep.mubr.f32.mxu1 %v607_v63 }
 0x1f3   :  { %534 = vmatmul.mubr.msk.f32.gmra.mrb[14].mxu0 %vm247_vm1, %v236_v52  ;;  %543 = vmatmul.mubr.msk.f32.gmra.mrb[14].mxu1 %vm247_vm1, %v245_v53 }
 0x1f4   :  { %414 = vmatprep.mubr.f32.mxu0 %v607_v63  ;;  %468 = vmatprep.mubr.f32.mxu1 %v607_v63 }
 0x1f7   :  { %535 = vmatmul.mubr.msk.f32.gmra.mrb[16].mxu0 %vm247_vm1, %v237_v54  ;;  %544 = vmatmul.mubr.msk.f32.gmra.mrb[16].mxu1 %vm247_vm1, %v246_v55 }
 0x2aa   :  { %v368_v56 = vpop.f32.mrb[0].mxu0  ;;  %v422_v57 = vpop.f32.mrb[0].mxu1 }
 0x2ab   :  { %475 = vst [vmem:[#allocation2] sm:$0xff] %v368_v56  ;;  %493 = vst [vmem:[#allocation2 + $0x90] sm:$0xff] %v422_v57  ;;  %v370_v62 = vpop.f32.mrb[1].mxu0  ;;  %v424_v0 = vpop.f32.mrb[1].mxu1 }
 0x2ac   :  { %476 = vst.msk [vmem:[#allocation2 + $0x8] sm:$0xff] %vm30_vm0, %v370_v62  ;;  %494 = vst.msk [vmem:[#allocation2 + $0x98] sm:$0xff] %vm30_vm0, %v424_v0 }
 0x2ae   :  { %v374_v63 = vpop.f32.mrb[2].mxu0  ;;  %v428_v1 = vpop.f32.mrb[2].mxu1 }
 0x2af   :  { %477 = vst [vmem:[#allocation2 + $0x10] sm:$0xff] %v374_v63  ;;  %495 = vst [vmem:[#allocation2 + $0xa0] sm:$0xff] %v428_v1  ;;  %v376_v2 = vpop.f32.mrb[3].mxu0  ;;  %v430_v3 = vpop.f32.mrb[3].mxu1 }
 0x2b0   :  { %478 = vst.msk [vmem:[#allocation2 + $0x18] sm:$0xff] %vm30_vm0, %v376_v2  ;;  %496 = vst.msk [vmem:[#allocation2 + $0xa8] sm:$0xff] %vm30_vm0, %v430_v3 }
 0x2b2   :  { %v380_v4 = vpop.f32.mrb[4].mxu0  ;;  %v434_v5 = vpop.f32.mrb[4].mxu1 }
 0x2b3   :  { %479 = vst [vmem:[#allocation2 + $0x20] sm:$0xff] %v380_v4  ;;  %497 = vst [vmem:[#allocation2 + $0xb0] sm:$0xff] %v434_v5  ;;  %v382_v6 = vpop.f32.mrb[5].mxu0  ;;  %v436_v7 = vpop.f32.mrb[5].mxu1 }
 0x2b4   :  { %480 = vst.msk [vmem:[#allocation2 + $0x28] sm:$0xff] %vm30_vm0, %v382_v6  ;;  %498 = vst.msk [vmem:[#allocation2 + $0xb8] sm:$0xff] %vm30_vm0, %v436_v7 }
 0x2b6   :  { %v386_v8 = vpop.f32.mrb[6].mxu0  ;;  %v440_v9 = vpop.f32.mrb[6].mxu1 }
 0x2b7   :  { %481 = vst [vmem:[#allocation2 + $0x30] sm:$0xff] %v386_v8  ;;  %499 = vst [vmem:[#allocation2 + $0xc0] sm:$0xff] %v440_v9  ;;  %v388_v10 = vpop.f32.mrb[7].mxu0  ;;  %v442_v11 = vpop.f32.mrb[7].mxu1 }
 0x2b8   :  { %482 = vst.msk [vmem:[#allocation2 + $0x38] sm:$0xff] %vm30_vm0, %v388_v10  ;;  %500 = vst.msk [vmem:[#allocation2 + $0xc8] sm:$0xff] %vm30_vm0, %v442_v11 }
 0x2ba   :  { %v392_v12 = vpop.f32.mrb[8].mxu0  ;;  %v446_v13 = vpop.f32.mrb[8].mxu1 }
 0x2bb   :  { %483 = vst [vmem:[#allocation2 + $0x40] sm:$0xff] %v392_v12  ;;  %501 = vst [vmem:[#allocation2 + $0xd0] sm:$0xff] %v446_v13  ;;  %v394_v14 = vpop.f32.mrb[9].mxu0  ;;  %v448_v15 = vpop.f32.mrb[9].mxu1 }
 0x2bc   :  { %484 = vst.msk [vmem:[#allocation2 + $0x48] sm:$0xff] %vm30_vm0, %v394_v14  ;;  %502 = vst.msk [vmem:[#allocation2 + $0xd8] sm:$0xff] %vm30_vm0, %v448_v15 }
 0x2be   :  { %v398_v16 = vpop.f32.mrb[10].mxu0  ;;  %v452_v17 = vpop.f32.mrb[10].mxu1 }
 0x2bf   :  { %485 = vst [vmem:[#allocation2 + $0x50] sm:$0xff] %v398_v16  ;;  %503 = vst [vmem:[#allocation2 + $0xe0] sm:$0xff] %v452_v17  ;;  %v400_v29 = vpop.f32.mrb[11].mxu0  ;;  %v454_v18 = vpop.f32.mrb[11].mxu1 }
 0x2c0   :  { %486 = vst.msk [vmem:[#allocation2 + $0x58] sm:$0xff] %vm30_vm0, %v400_v29  ;;  %504 = vst.msk [vmem:[#allocation2 + $0xe8] sm:$0xff] %vm30_vm0, %v454_v18 }
 0x2c2   :  { %v404_v30 = vpop.f32.mrb[12].mxu0  ;;  %v458_v41 = vpop.f32.mrb[12].mxu1 }
 0x2c3   :  { %487 = vst [vmem:[#allocation2 + $0x60] sm:$0xff] %v404_v30  ;;  %505 = vst [vmem:[#allocation2 + $0xf0] sm:$0xff] %v458_v41  ;;  %v406_v42 = vpop.f32.mrb[13].mxu0  ;;  %v460_v19 = vpop.f32.mrb[13].mxu1 }
 0x2c4   :  { %488 = vst.msk [vmem:[#allocation2 + $0x68] sm:$0xff] %vm30_vm0, %v406_v42  ;;  %506 = vst.msk [vmem:[#allocation2 + $0xf8] sm:$0xff] %vm30_vm0, %v460_v19 }
 0x2c6   :  { %v410_v20 = vpop.f32.mrb[14].mxu0  ;;  %v464_v21 = vpop.f32.mrb[14].mxu1 }
 0x2c7   :  { %489 = vst [vmem:[#allocation2 + $0x70] sm:$0xff] %v410_v20  ;;  %507 = vst [vmem:[#allocation2 + $0x100] sm:$0xff] %v464_v21  ;;  %v412_v22 = vpop.f32.mrb[15].mxu0  ;;  %v466_v23 = vpop.f32.mrb[15].mxu1 }
 0x2c8   :  { %490 = vst.msk [vmem:[#allocation2 + $0x78] sm:$0xff] %vm30_vm0, %v412_v22  ;;  %508 = vst.msk [vmem:[#allocation2 + $0x108] sm:$0xff] %vm30_vm0, %v466_v23 }
 0x2ca   :  { %v416_v24 = vpop.f32.mrb[16].mxu0  ;;  %v470_v25 = vpop.f32.mrb[16].mxu1 }
 0x2cb   :  { %491 = vst [vmem:[#allocation2 + $0x80] sm:$0xff] %v416_v24  ;;  %509 = vst [vmem:[#allocation2 + $0x110] sm:$0xff] %v470_v25  ;;  %v418_v26 = vpop.f32.mrb[17].mxu0  ;;  %v472_v31 = vpop.f32.mrb[17].mxu1 }
 0x2cc   :  { %492 = vst.msk [vmem:[#allocation2 + $0x88] sm:$0xff] %vm30_vm0, %v418_v26  ;;  %510 = vst.msk [vmem:[#allocation2 + $0x118] sm:$0xff] %vm30_vm0, %v472_v31 }
 0x2cd   :  { %593 = shalt.err (!%p590_p4)
}
 0x2ce   :  { %s594_s18 = scalar_lea.hbm %s904_s4, 4608 }
 0x2cf   :  { %p595_p5 = scmp.ne.s32.totalorder %s904_s4, %s594_s18  ;;  %p598_p6 = scmp.lt.u32.totalorder %s594_s18, %s904_s4 }
 0x2d1   :  { %p600_p7 = pnand %p598_p6, %p595_p5 }
 0x2d3   :  { %603 = shalt.err (!%p600_p7)
}
 0x2d4   :  { %s609_s23 = smov 256   ;;  %s610_s24 = smov 16  }
 0x2d5   :  { %522 = dma.vmem_to_hbm [thread:$0]  %s517_s14, 4608, %s904_s4, [#allocation3], %s609_s23, %s609_s23, %s610_s24  }
 0x2d6   :  { %604 = dma.done.wait [#allocation3], 4608  }
 0x2d7   :  { %605 = vsyncadd [#allocation3], 4294962688 }
 0x2d8   :  { %526 = vsyncpa [#allocation3], 1 }

</bundles_post_ra>
